<compile_context>
chip_gen: v7x
topology: tpu7x:2x2x1
jax: 0.10.0
libtpu: 0.0.40
codegen_flags: <defaults>
</compile_context>

<pallas_src>
import jax
import jax.numpy as jnp
from jax import lax
from jax.experimental import pallas as pl
from jax.experimental.pallas import tpu as pltpu


def _linear_shift_kernel(wT_ref, b_ref, mu_ref, lv_ref, mu_o_ref, lv_o_ref):
    # wT_ref: (L, 2*n_z, 2*n_z)  block-diagonal weights, (in, out) per layer
    # b_ref : (L, 1, 2*n_z)      concatenated biases [b_mu | b_lv]
    # mu_ref, lv_ref: (B, n_z)   branch activations
    n_z = mu_ref.shape[-1]
    # In-kernel lane concat: [mu | logvar] -> (B, 2*n_z). One vreg-level op.
    x = jnp.concatenate(
        [mu_ref[...].astype(jnp.float32), lv_ref[...].astype(jnp.float32)],
        axis=-1)
    n_layers = wT_ref.shape[0]
    # Plain [M,K] x [K,N] contraction — weights already (in, out), so no
    # transpose can be emitted by the lowering.
    dn = (((1,), (0,)), ((), ()))
    for l in range(n_layers):              # L is static -> fully unrolled
        x = lax.dot_general(x, wT_ref[l], dimension_numbers=dn,
                            preferred_element_type=jnp.float32) + b_ref[l]
    # In-kernel split back into the two branches (static slices).
    mu_o_ref[...] = x[:, :n_z].astype(mu_o_ref.dtype)
    lv_o_ref[...] = x[:, n_z:].astype(lv_o_ref.dtype)


def prepare_linear_shift_params(w_mu, b_mu, w_lv, b_lv):
    """One-time parameter packing (call once per parameter update, NOT per step).

    w_mu, w_lv: [L, n_z, n_z] in PyTorch (out, in) orientation.
    b_mu, b_lv: [L, n_z].

    Returns:
      wT_block: [L, 2*n_z, 2*n_z] block-diagonal weights in (in, out) layout
                so the kernel contracts with a plain [M,K] x [K,N] matmul.
      b_block : [L, 1, 2*n_z] concatenated biases.
    """
    L, n_z, _ = w_mu.shape
    zeros = jnp.zeros((L, n_z, n_z), dtype=w_mu.dtype)
    w_top = jnp.concatenate([w_mu, zeros], axis=-1)        # (L, n_z, 2n_z)
    w_bot = jnp.concatenate([zeros, w_lv], axis=-1)        # (L, n_z, 2n_z)
    w_block = jnp.concatenate([w_top, w_bot], axis=-2)     # (L, 2n_z, 2n_z) (out,in)
    wT_block = jnp.swapaxes(w_block, -1, -2)               # (L, 2n_z, 2n_z) (in,out)
    b_block = jnp.concatenate([b_mu, b_lv], axis=-1)[:, None, :]  # (L, 1, 2n_z)
    return wT_block, b_block


@jax.jit
def linear_shift(mu, logvar, wT_block, b_block):
    """mu, logvar: [B, n_z]; wT_block/b_block from prepare_linear_shift_params."""
    B, n_z = mu.shape
    L = wT_block.shape[0]

    bytes_accessed = int(
        wT_block.size * wT_block.dtype.itemsize
        + b_block.size * b_block.dtype.itemsize
        + 2 * (mu.size * mu.dtype.itemsize + logvar.size * logvar.dtype.itemsize))

    vmem_spec = pl.BlockSpec(memory_space=pltpu.MemorySpace.VMEM)
    mu_out, lv_out = pl.pallas_call(
        _linear_shift_kernel,
        out_shape=(jax.ShapeDtypeStruct((B, n_z), mu.dtype),
                   jax.ShapeDtypeStruct((B, n_z), logvar.dtype)),
        in_specs=[vmem_spec, vmem_spec, vmem_spec, vmem_spec],
        out_specs=(vmem_spec, vmem_spec),
        cost_estimate=pl.CostEstimate(
            flops=2 * B * (2 * n_z) * (2 * n_z) * L,
            transcendentals=0,
            bytes_accessed=bytes_accessed),
    )(wT_block, b_block, mu, logvar)
    return mu_out, lv_out


def _reference(mu, logvar, w_mu, b_mu, w_lv, b_lv):
    for l in range(w_mu.shape[0]):
        mu = mu @ w_mu[l].T + b_mu[l]
        logvar = logvar @ w_lv[l].T + b_lv[l]
    return mu, logvar


if __name__ == "__main__":
    # config: n_z = 32, n_shift_layers = 3, batch = 8
    B, n_z, n_layers = 8, 32, 3

    key = jax.random.PRNGKey(0)
    k_mu, k_lv, k_wm, k_bm, k_wl, k_bl = jax.random.split(key, 6)

    mu = jax.random.normal(k_mu, (B, n_z), dtype=jnp.float32)
    logvar = jax.random.normal(k_lv, (B, n_z), dtype=jnp.float32)

    # Deterministic init mimicking PyTorch Linear's U(-1/sqrt(in), 1/sqrt(in)).
    bound = 1.0 / jnp.sqrt(jnp.float32(n_z))
    w_mu = jax.random.uniform(k_wm, (n_layers, n_z, n_z),
                              minval=-bound, maxval=bound, dtype=jnp.float32)
    b_mu = jax.random.uniform(k_bm, (n_layers, n_z),
                              minval=-bound, maxval=bound, dtype=jnp.float32)
    w_lv = jax.random.uniform(k_wl, (n_layers, n_z, n_z),
                              minval=-bound, maxval=bound, dtype=jnp.float32)
    b_lv = jax.random.uniform(k_bl, (n_layers, n_z),
                              minval=-bound, maxval=bound, dtype=jnp.float32)

    # One-time packing (hoisted out of the hot path).
    wT_block, b_block = prepare_linear_shift_params(w_mu, b_mu, w_lv, b_lv)
    wT_block, b_block = jax.block_until_ready((wT_block, b_block))

    mu_out, lv_out = jax.block_until_ready(
        linear_shift(mu, logvar, wT_block, b_block))

    mu_ref, lv_ref = _reference(mu, logvar, w_mu, b_mu, w_lv, b_lv)
    assert jnp.allclose(mu_out, mu_ref, atol=1e-5, rtol=1e-5)
    assert jnp.allclose(lv_out, lv_ref, atol=1e-5, rtol=1e-5)

    print("KERNEL_OK")
</pallas_src>

<mosaic_0001>
module attributes {stable_mosaic.version = 11 : i64} {
  func.func @_linear_shift_kernel(%arg0: memref<3x64x64xf32, #tpu.memory_space<vmem>>, %arg1: memref<3x1x64xf32, #tpu.memory_space<vmem>>, %arg2: memref<8x32xf32, #tpu.memory_space<vmem>>, %arg3: memref<8x32xf32, #tpu.memory_space<vmem>>, %arg4: memref<8x32xf32, #tpu.memory_space<vmem>>, %arg5: memref<8x32xf32, #tpu.memory_space<vmem>>) attributes {dimension_semantics = [], scalar_prefetch = 0 : i64, scratch_operands = 0 : i64, tpu.core_type = #tpu.core_type<tc>} {
    %c0 = arith.constant 0 : index
    %c0_0 = arith.constant 0 : index
    %0 = vector.load %arg2[%c0, %c0_0] : memref<8x32xf32, #tpu.memory_space<vmem>>, vector<8x32xf32>
    %c0_1 = arith.constant 0 : index
    %c0_2 = arith.constant 0 : index
    %1 = vector.load %arg3[%c0_1, %c0_2] : memref<8x32xf32, #tpu.memory_space<vmem>>, vector<8x32xf32>
    %2 = tpu.concatenate %0, %1 in 1 : vector<8x32xf32>, vector<8x32xf32> -> vector<8x64xf32>
    %c0_3 = arith.constant 0 : index
    %c0_4 = arith.constant 0 : index
    %c0_5 = arith.constant 0 : index
    %3 = vector.load %arg0[%c0_3, %c0_4, %c0_5] : memref<3x64x64xf32, #tpu.memory_space<vmem>>, vector<1x64x64xf32>
    %4 = vector.shape_cast %3 : vector<1x64x64xf32> to vector<64x64xf32>
    %cst = arith.constant dense<0.000000e+00> : vector<8x64xf32>
    %5 = tpu.matmul %2, %4, %cst {dimension_numbers = #tpu.dot_dimension_numbers<[1], [0], [0], [1], [0, 0, 1, 1], [], []>} : vector<8x64xf32>, vector<64x64xf32>, vector<8x64xf32> -> vector<8x64xf32>
    %c0_6 = arith.constant 0 : index
    %c0_7 = arith.constant 0 : index
    %c0_8 = arith.constant 0 : index
    %6 = vector.load %arg1[%c0_6, %c0_7, %c0_8] : memref<3x1x64xf32, #tpu.memory_space<vmem>>, vector<1x1x64xf32>
    %7 = vector.shape_cast %6 : vector<1x1x64xf32> to vector<1x64xf32>
    %8 = vector.broadcast %7 : vector<1x64xf32> to vector<8x64xf32>
    %9 = arith.addf %5, %8 : vector<8x64xf32>
    %c1 = arith.constant 1 : index
    %c0_9 = arith.constant 0 : index
    %c0_10 = arith.constant 0 : index
    %10 = vector.load %arg0[%c1, %c0_9, %c0_10] : memref<3x64x64xf32, #tpu.memory_space<vmem>>, vector<1x64x64xf32>
    %11 = vector.shape_cast %10 : vector<1x64x64xf32> to vector<64x64xf32>
    %cst_11 = arith.constant dense<0.000000e+00> : vector<8x64xf32>
    %12 = tpu.matmul %9, %11, %cst_11 {dimension_numbers = #tpu.dot_dimension_numbers<[1], [0], [0], [1], [0, 0, 1, 1], [], []>} : vector<8x64xf32>, vector<64x64xf32>, vector<8x64xf32> -> vector<8x64xf32>
    %c1_12 = arith.constant 1 : index
    %c0_13 = arith.constant 0 : index
    %c0_14 = arith.constant 0 : index
    %13 = vector.load %arg1[%c1_12, %c0_13, %c0_14] : memref<3x1x64xf32, #tpu.memory_space<vmem>>, vector<1x1x64xf32>
    %14 = vector.shape_cast %13 : vector<1x1x64xf32> to vector<1x64xf32>
    %15 = vector.broadcast %14 : vector<1x64xf32> to vector<8x64xf32>
    %16 = arith.addf %12, %15 : vector<8x64xf32>
    %c2 = arith.constant 2 : index
    %c0_15 = arith.constant 0 : index
    %c0_16 = arith.constant 0 : index
    %17 = vector.load %arg0[%c2, %c0_15, %c0_16] : memref<3x64x64xf32, #tpu.memory_space<vmem>>, vector<1x64x64xf32>
    %18 = vector.shape_cast %17 : vector<1x64x64xf32> to vector<64x64xf32>
    %cst_17 = arith.constant dense<0.000000e+00> : vector<8x64xf32>
    %19 = tpu.matmul %16, %18, %cst_17 {dimension_numbers = #tpu.dot_dimension_numbers<[1], [0], [0], [1], [0, 0, 1, 1], [], []>} : vector<8x64xf32>, vector<64x64xf32>, vector<8x64xf32> -> vector<8x64xf32>
    %c2_18 = arith.constant 2 : index
    %c0_19 = arith.constant 0 : index
    %c0_20 = arith.constant 0 : index
    %20 = vector.load %arg1[%c2_18, %c0_19, %c0_20] : memref<3x1x64xf32, #tpu.memory_space<vmem>>, vector<1x1x64xf32>
    %21 = vector.shape_cast %20 : vector<1x1x64xf32> to vector<1x64xf32>
    %22 = vector.broadcast %21 : vector<1x64xf32> to vector<8x64xf32>
    %23 = arith.addf %19, %22 : vector<8x64xf32>
    %24 = vector.extract_strided_slice %23 {offsets = [0, 0], sizes = [8, 32], strides = [1, 1]} : vector<8x64xf32> to vector<8x32xf32>
    %c0_21 = arith.constant 0 : index
    %c0_22 = arith.constant 0 : index
    %25 = vector.load %arg4[%c0_21, %c0_22] : memref<8x32xf32, #tpu.memory_space<vmem>>, vector<8x32xf32>
    tpu.vector_store %arg4[%c0_21, %c0_22], %24 {strides = array<i32>} : memref<8x32xf32, #tpu.memory_space<vmem>>, vector<8x32xf32>,
    %26 = vector.extract_strided_slice %23 {offsets = [0, 32], sizes = [8, 32], strides = [1, 1]} : vector<8x64xf32> to vector<8x32xf32>
    %c0_23 = arith.constant 0 : index
    %c0_24 = arith.constant 0 : index
    %27 = vector.load %arg5[%c0_23, %c0_24] : memref<8x32xf32, #tpu.memory_space<vmem>>, vector<8x32xf32>
    tpu.vector_store %arg5[%c0_23, %c0_24], %26 {strides = array<i32>} : memref<8x32xf32, #tpu.memory_space<vmem>>, vector<8x32xf32>,
    return
  }
}

</mosaic_0001>

<bundles_post_ra>
// kernel: linear_shift.1
= control target key start
LH: loop header
LB: loop body
LE: loop exit
PB: predicated region body
PF: predicated region fallthrough
CT: control target
= control target key end

     0   :  { %11 = vsyncpa [#allocation3], 0  ;;  %s768_s0 = inlined_call_operand.hbm [shape: f32[3,64,64], index: 0, kind: input, shape index: {}]   ;;  %s769_s1 = inlined_call_operand.vmem [shape: f32[3,1,64], index: 1, kind: input, shape index: {}]   ;;  %s770_s2 = inlined_call_operand.hbm [shape: f32[8,32], index: 2, kind: input, shape index: {}]   ;;  %s771_s3 = inlined_call_operand.hbm [shape: f32[8,32], index: 3, kind: input, shape index: {}]   ;;  %s772_s4 = inlined_call_operand.hbm [shape: f32[8,32], index: 4, kind: output, shape index: {0}]   ;;  %s773_s5 = inlined_call_operand.hbm [shape: f32[8,32], index: 5, kind: output, shape index: {1}]  }
   0x1   :  { %12 = vsyncpa [#allocation6], 0 }
   0x2   :  { %13 = vsyncpa [#allocation4], 0 }
   0x3   :  { %14 = vsyncpa [#allocation10], 0  ;;  %s629_s18 = smov [#allocation5]   ;;  %s630_s20 = smov [#allocation2]  }
   0x4   :  { %s35_s19 = sshll.u32 %s629_s18, 4  ;;  %s20_s21 = sshll.u32 %s630_s20, 4  ;;  %s36_s19 = int_to_ptr.vmem [resolvable:$true] %s35_s19  ;;  %s671_s21 = int_to_ptr.vmem [resolvable:$true] %s20_s21 }
   0x5   :  { %s511_s24 = scalar_lea.hbm %s770_s2, 128 }
   0x6   :  { %p512_p0 = scmp.ne.s32.totalorder %s770_s2, %s511_s24  ;;  %p515_p1 = scmp.lt.u32.totalorder %s511_s24, %s770_s2 }
   0x8   :  { %p517_p2 = pnand %p515_p1, %p512_p0 }
   0xa   :  { %520 = shalt.err (!%p517_p2)
}
   0xb   :  { %s521_s29 = scalar_lea.vmem %s36_s19, 128  ;;  %p526_p4 = scmp.lt.s32.totalorder %s36_s19, %s36_s19 }
   0xc   :  { %p522_p3 = scmp.ne.s32.totalorder %s36_s19, %s521_s29  ;;  %p527_p5 = scmp.lt.s32.totalorder %s521_s29, %s521_s29 }
   0xe   :  { %p528_p6 = por %p527_p5, %p526_p4 }
  0x10   :  { %p529_p7 = pnand %p528_p6, %p522_p3 }
  0x12   :  { %532 = shalt.err (!%p529_p7)
}
  0x13   :  { %38 = dma.hbm_to_vmem [thread:$0]  %s770_s2, 128, %s36_s19, [#allocation6]  }
  0x14   :  { %s533_s9 = scalar_lea.hbm %s768_s0, 3072 }
  0x15   :  { %p534_p8 = scmp.ne.s32.totalorder %s768_s0, %s533_s9  ;;  %p537_p9 = scmp.lt.u32.totalorder %s533_s9, %s768_s0 }
  0x17   :  { %p539_p10 = pnand %p537_p9, %p534_p8 }
  0x19   :  { %542 = shalt.err (!%p539_p10)
}
  0x1a   :  { %s543_s14 = scalar_lea.vmem %s671_s21, 3072  ;;  %p548_p12 = scmp.lt.s32.totalorder %s671_s21, %s671_s21 }
  0x1b   :  { %p544_p11 = scmp.ne.s32.totalorder %s671_s21, %s543_s14  ;;  %p549_p13 = scmp.lt.s32.totalorder %s543_s14, %s543_s14 }
  0x1d   :  { %p550_p0 = por %p549_p13, %p548_p12 }
  0x1f   :  { %p551_p1 = pnand %p550_p0, %p544_p11 }
  0x21   :  { %554 = shalt.err (!%p551_p1)
}
  0x22   :  { %s631_s2 = smov 128   ;;  %s632_s15 = smov 8  }
  0x23   :  { %26 = dma.hbm_to_vmem [thread:$0]  %s768_s0, 3072, %s671_s21, [#allocation3], %s631_s2, %s631_s2, %s632_s15  }
  0x24   :  { %s633_s18 = smov [#allocation7]   ;;  %s555_s23 = scalar_lea.hbm %s771_s3, 128 }
  0x25   :  { %s45_s19 = sshll.u32 %s633_s18, 4  ;;  %p556_p2 = scmp.ne.s32.totalorder %s771_s3, %s555_s23  ;;  %s46_s19 = int_to_ptr.vmem [resolvable:$true] %s45_s19 }
  0x26   :  { %p559_p3 = scmp.lt.u32.totalorder %s555_s23, %s771_s3 }
  0x28   :  { %p561_p4 = pnand %p559_p3, %p556_p2 }
  0x2a   :  { %564 = shalt.err (!%p561_p4)
}
  0x2b   :  { %s565_s28 = scalar_lea.vmem %s46_s19, 128  ;;  %p570_p6 = scmp.lt.s32.totalorder %s46_s19, %s46_s19 }
  0x2c   :  { %p566_p5 = scmp.ne.s32.totalorder %s46_s19, %s565_s28  ;;  %p571_p7 = scmp.lt.s32.totalorder %s565_s28, %s565_s28 }
  0x2e   :  { %p572_p8 = por %p571_p7, %p570_p6 }
  0x30   :  { %p573_p9 = pnand %p572_p8, %p566_p5 }
  0x32   :  { %576 = shalt.err (!%p573_p9)
}
  0x33   :  { %48 = dma.hbm_to_vmem [thread:$0]  %s771_s3, 128, %s46_s19, [#allocation6]  }
  0x34   :  { %621 = dma.done.wait [#allocation3], 3072  }
  0x35   :  { %622 = vsyncadd [#allocation3], 4294964224 }
  0x36   :  { %623 = dma.done.wait [#allocation6], 256  }
  0x37   :  { %624 = vsyncadd [#allocation6], 4294967040  ;;  %v634_v0 = vmov 0.0|0.0   ;;  %vm635_vm0 = vmmov 0   ;;  %v636_v1 = vmov 0.0   ;;  %v59_v2 = vld [vmem:[#allocation7] sm:$0xff] }
  0x38   :  { %463 = vmatprep.subr.bf16.mxu0 %v634_v0  ;;  %475 = vmatprep.subr.bf16.mxu1 %v634_v0  ;;  %v66_v3 = vld [vmem:[#allocation2] sm:$0xff]  ;;  %v67_v4 = vld [vmem:[#allocation2 + $0x8] sm:$0xff]  ;;  %s637_s29 = smov 32   ;;  %v68_v6 = vld [vmem:[#allocation2 + $0x10] sm:$0xff]  ;;  %vm64_vm1 = vcmask 261120   ;;  %vm81_vm2 = vcmask 523264  }
  0x39   :  { %422 = vmatprep.mubr.msk.f32.mxu0 %vm635_vm0, %v636_v1  ;;  %441 = vmatprep.mubr.msk.f32.mxu1 %vm635_vm0, %v636_v1  ;;  %v464_v5 = vpack.c.bf16 %v67_v4, %v66_v3  ;;  %v69_v7 = vld [vmem:[#allocation2 + $0x18] sm:$0xff]  ;;  %v70_v9 = vld [vmem:[#allocation2 + $0x20] sm:$0xff]  ;;  %v157_v11 = vld [vmem:[#allocation2 + $0x48] sm:$0xff]  ;;  %s638_s10 = smov [#allocation8]   ;;  %s639_s12 = smov 96  }
  0x3a   :  { %61 = vrot.lane.b32.xlu0 %v59_v2, %s637_s29  ;;  %v467_v8 = vpack.c.bf16 %v69_v7, %v68_v6  ;;  %v156_v10 = vld [vmem:[#allocation2 + $0x40] sm:$0xff]  ;;  %v71_v12 = vld [vmem:[#allocation2 + $0x28] sm:$0xff]  ;;  %v158_v14 = vld [vmem:[#allocation2 + $0x50] sm:$0xff]  ;;  %s347_s11 = sshll.u32 %s638_s10, 4  ;;  %s348_s11 = int_to_ptr.vmem [resolvable:$true] %s347_s11 }
  0x3b   :  { %465 = vmatpush3.bf16.msra.mxu0 %v464_v5  ;;  %v476_v13 = vpack.c.bf16 %v157_v11, %v156_v10  ;;  %v159_v15 = vld [vmem:[#allocation2 + $0x58] sm:$0xff]  ;;  %v470_v17 = vpack.c.bf16 %v71_v12, %v70_v9  ;;  %v160_v18 = vld [vmem:[#allocation2 + $0x60] sm:$0xff]  ;;  %v161_v19 = vld [vmem:[#allocation2 + $0x68] sm:$0xff]  ;;  %s577_s13 = scalar_lea.vmem %s348_s11, 128  ;;  %p582_p11 = scmp.lt.s32.totalorder %s348_s11, %s348_s11 }
  0x3c   :  { %466 = vmatprep.subr.bf16.mxu0 %v634_v0  ;;  %v479_v16 = vpack.c.bf16 %v159_v15, %v158_v14  ;;  %v72_v20 = vld [vmem:[#allocation2 + $0x30] sm:$0xff]  ;;  %v73_v21 = vld [vmem:[#allocation2 + $0x38] sm:$0xff]  ;;  %v482_v22 = vpack.c.bf16 %v161_v19, %v160_v18  ;;  %v58_v24 = vld [vmem:[#allocation5] sm:$0xff]  ;;  %p578_p10 = scmp.ne.s32.totalorder %s348_s11, %s577_s13  ;;  %p583_p12 = scmp.lt.s32.totalorder %s577_s13, %s577_s13 }
  0x3d   :  { %477 = vmatpush3.bf16.msra.mxu1 %v476_v13  ;;  %v473_v23 = vpack.c.bf16 %v73_v21, %v72_v20  ;;  %v162_v27 = vld [vmem:[#allocation2 + $0x70] sm:$0xff]  ;;  %v163_v28 = vld [vmem:[#allocation2 + $0x78] sm:$0xff]  ;;  %v246_v30 = vld [vmem:[#allocation2 + $0x80] sm:$0xff] }
  0x3e   :  { %478 = vmatprep.subr.bf16.mxu1 %v634_v0  ;;  %v485_v29 = vpack.c.bf16 %v163_v28, %v162_v27  ;;  %v247_v31 = vld [vmem:[#allocation2 + $0x88] sm:$0xff]  ;;  %v248_v32 = vld [vmem:[#allocation2 + $0x90] sm:$0xff]  ;;  %v249_v34 = vld [vmem:[#allocation2 + $0x98] sm:$0xff]  ;;  %p584_p13 = por %p583_p12, %p582_p11 }
  0x3f   :  { %468 = vmatpush3.bf16.msra.mxu0 %v467_v8  ;;  %v488_v33 = vpack.c.bf16 %v247_v31, %v246_v30  ;;  %v491_v35 = vpack.c.bf16 %v249_v34, %v248_v32  ;;  %v250_v36 = vld [vmem:[#allocation2 + $0xa0] sm:$0xff]  ;;  %v251_v37 = vld [vmem:[#allocation2 + $0xa8] sm:$0xff]  ;;  %v252_v43 = vld [vmem:[#allocation2 + $0xb0] sm:$0xff] }
  0x40   :  { %469 = vmatprep.subr.bf16.mxu0 %v634_v0  ;;  %v494_v38 = vpack.c.bf16 %v251_v37, %v250_v36  ;;  %v371_v39 = vld [vmem:[%s769_s1] ss:$0 sm:$0xff]  ;;  %v253_v44 = vld [vmem:[#allocation2 + $0xb8] sm:$0xff]  ;;  %v374_v46 = vld [vmem:[%s769_s1 + $0x1] ss:$0 sm:$0xff]  ;;  %p585_p0 = pnand %p584_p13, %p578_p10 }
  0x41   :  { %480 = vmatpush3.bf16.msra.mxu1 %v479_v16  ;;  %v497_v45 = vpack.c.bf16 %v253_v44, %v252_v43  ;;  %v377_v50 = vld [vmem:[%s769_s1 + $0x2] ss:$0 sm:$0xff] }
  0x42   :  { %481 = vmatprep.subr.bf16.mxu1 %v634_v0 }
  0x43   :  { %471 = vmatpush3.bf16.msra.mxu0 %v470_v17 }
  0x44   :  { %472 = vmatprep.subr.bf16.mxu0 %v634_v0 }
  0x45   :  { %483 = vmatpush3.bf16.msra.mxu1 %v482_v22 }
  0x46   :  { %484 = vmatprep.subr.bf16.mxu1 %v634_v0 }
  0x47   :  { %474 = vmatpush3.bf16.msra.mxu0 %v473_v23 }
  0x48   :  { %487 = vmatprep.subr.bf16.mxu0 %v634_v0 }
  0x49   :  { %486 = vmatpush3.bf16.msra.mxu1 %v485_v29 }
  0xac   :  { %v62_v25 = vpop.permute.xlu0 %61 }
  0xad   :  { %v65_v26 = vsel %vm64_vm1, %v58_v24, %v62_v25 }
  0xae   :  { %423 = vmatmul.mubr.msk.f32.vlgmr.msra.gmra.mrb[0].mxu0 %vm81_vm2, %v65_v26 }
  0xaf   :  { %460 = vmatprep.mubr.msk.f32.mxu0 %vm635_vm0, %v636_v1  ;;  %489 = vmatpush3.bf16.msra.mxu0 %v488_v33 }
  0xb0   :  { %490 = vmatprep.subr.bf16.mxu0 %v634_v0 }
  0xb3   :  { %492 = vmatpush3.bf16.msra.mxu0 %v491_v35 }
  0xb4   :  { %493 = vmatprep.subr.bf16.mxu0 %v634_v0 }
  0xb7   :  { %495 = vmatpush3.bf16.msra.mxu0 %v494_v38 }
  0xb8   :  { %496 = vmatprep.subr.bf16.mxu0 %v634_v0 }
  0xbb   :  { %498 = vmatpush3.bf16.msra.mxu0 %v497_v45 }
 0x181   :  { %v151_v40 = vpop.f32.mrb[0].mxu0 }
 0x182   :  { %v152_v41 = vadd.f32 %v371_v39, %v151_v40  ;;  %v424_v42 = vpop.f32.mrb[1].mxu0 }
 0x184   :  { %442 = vmatmul.mubr.msk.f32.vlgmr.msra.gmra.mrb[0].mxu1 %vm81_vm2, %v152_v41 }
 0x257   :  { %v241_v47 = vpop.f32.mrb[0].mxu1 }
 0x258   :  { %v242_v48 = vadd.f32 %v374_v46, %v241_v47  ;;  %v443_v49 = vpop.f32.mrb[1].mxu1 }
 0x25a   :  { %461 = vmatmul.mubr.msk.f32.vlgmr.msra.gmra.mrb[2].mxu0 %vm81_vm2, %v242_v48 }
 0x32d   :  { %v331_v51 = vpop.f32.mrb[2].mxu0 }
 0x32e   :  { %v332_v52 = vadd.f32 %v377_v50, %v331_v51  ;;  %v462_v53 = vpop.f32.mrb[3].mxu0 }
 0x330   :  { %335 = vst.msk [vmem:[#allocation8] sm:$0xff] %vm64_vm1, %v332_v52  ;;  %337 = vrot.lane.b32.xlu0 %v332_v52, %s639_s12 }
 0x331   :  { %588 = shalt.err (!%p585_p0)
}
 0x332   :  { %s589_s1 = scalar_lea.hbm %s772_s4, 128 }
 0x333   :  { %p590_p1 = scmp.ne.s32.totalorder %s772_s4, %s589_s1  ;;  %p593_p2 = scmp.lt.u32.totalorder %s589_s1, %s772_s4 }
 0x335   :  { %p595_p3 = pnand %p593_p2, %p590_p1 }
 0x337   :  { %598 = shalt.err (!%p595_p3)
}
 0x338   :  { %350 = dma.vmem_to_hbm [thread:$0]  %s348_s11, 128, %s772_s4, [#allocation4]  }
 0x339   :  { %s640_s22 = smov [#allocation9]  }
 0x33a   :  { %s357_s23 = sshll.u32 %s640_s22, 4  ;;  %s358_s23 = int_to_ptr.vmem [resolvable:$true] %s357_s23 }
 0x33b   :  { %s599_s24 = scalar_lea.vmem %s358_s23, 128  ;;  %p604_p5 = scmp.lt.s32.totalorder %s358_s23, %s358_s23 }
 0x33c   :  { %p600_p4 = scmp.ne.s32.totalorder %s358_s23, %s599_s24  ;;  %p605_p6 = scmp.lt.s32.totalorder %s599_s24, %s599_s24 }
 0x33e   :  { %p606_p7 = por %p605_p6, %p604_p5 }
 0x340   :  { %p607_p8 = pnand %p606_p7, %p600_p4 }
 0x3a2   :  { %v338_v54 = vpop.permute.xlu0 %337 }
 0x3a3   :  { %340 = vst.msk [vmem:[#allocation9] sm:$0xff] %vm64_vm1, %v338_v54 }
 0x3a4   :  { %610 = shalt.err (!%p607_p8)
}
 0x3a5   :  { %s611_s27 = scalar_lea.hbm %s773_s5, 128 }
 0x3a6   :  { %p612_p9 = scmp.ne.s32.totalorder %s773_s5, %s611_s27  ;;  %p615_p10 = scmp.lt.u32.totalorder %s611_s27, %s773_s5 }
 0x3a8   :  { %p617_p11 = pnand %p615_p10, %p612_p9 }
 0x3aa   :  { %620 = shalt.err (!%p617_p11)
}
 0x3ab   :  { %360 = dma.vmem_to_hbm [thread:$0]  %s358_s23, 128, %s773_s5, [#allocation10]  }
 0x3ac   :  { %625 = dma.done.wait [#allocation4], 128  }
 0x3ad   :  { %626 = vsyncadd [#allocation4], 4294967168 }
 0x3ae   :  { %627 = dma.done.wait [#allocation10], 128  }
 0x3af   :  { %628 = vsyncadd [#allocation10], 4294967168 }
 0x3b0   :  { %367 = vsyncpa [#allocation3], 1 }
 0x3b1   :  { %368 = vsyncpa [#allocation6], 1 }
 0x3b2   :  { %369 = vsyncpa [#allocation4], 1 }
 0x3b3   :  { %370 = vsyncpa [#allocation10], 1 }

</bundles_post_ra>
